<compile_context>
chip_gen: v6e
topology: v6e:2x2x1
jax: 0.10.0
libtpu: 0.0.40
codegen_flags: <defaults>
</compile_context>

<pallas_src>
import jax
import jax.numpy as jnp
from jax.experimental import pallas as pl
from jax.experimental.pallas import tpu as pltpu

LANE = 128
BF16_SUBLANE = 16          # bf16 packs 16 rows per vreg
HIDDEN = (500, 100, 30)


def _round_up(n, m):
    return -(-n // m) * m


def init_params(key, input_size, num_classes):
    """PyTorch nn.Linear-style init. Weights stored as (in, out) = W^T, bias (1, out)."""
    dims = [(input_size, HIDDEN[0]), (HIDDEN[0], HIDDEN[1]),
            (HIDDEN[1], HIDDEN[2]), (HIDDEN[2], num_classes)]
    params = {}
    for i, (din, dout) in enumerate(dims, start=1):
        key, kw, kb = jax.random.split(key, 3)
        bound = 1.0 / (din ** 0.5)
        params[f"w{i}"] = jax.random.uniform(
            kw, (din, dout), jnp.float32, minval=-bound, maxval=bound)
        params[f"b{i}"] = jax.random.uniform(
            kb, (1, dout), jnp.float32, minval=-bound, maxval=bound)
    return params


def prepare_params(params, input_size):
    """Pad feature dims to multiples of 128, cast weights to bf16, pack biases.

    Do this ONCE and reuse the returned buffers across forward calls so only x
    moves per step.  Zero padding + ReLU keeps semantics exact.
    Returns dict with w1..w4 (bf16, padded) and b_all (1, sum_of_padded_outs) f32.
    """
    prepped = {}
    bias_parts = []
    prev_padded = input_size                      # layer-1 K dim is raw input size
    for i in range(1, 5):
        w = params[f"w{i}"]
        b = params[f"b{i}"]
        din, dout = w.shape
        dout_p = _round_up(dout, LANE)
        w_p = jnp.zeros((prev_padded, dout_p), jnp.bfloat16)
        w_p = w_p.at[:din, :dout].set(w.astype(jnp.bfloat16))
        b_p = jnp.zeros((1, dout_p), jnp.float32).at[:, :dout].set(b)
        prepped[f"w{i}"] = w_p
        bias_parts.append(b_p)
        prev_padded = dout_p
    prepped["b_all"] = jnp.concatenate(bias_parts, axis=1)   # (1, 512+128+128+128)
    return prepped


def nnh3_relu_forward(x, prepped, num_classes, *, tb_max=256,
                      out_dtype=jnp.float32):
    """x: (B, input_size) f32.  prepped: output of prepare_params."""
    B, din = x.shape
    d1 = prepped["w1"].shape[1]
    d2 = prepped["w2"].shape[1]
    d3 = prepped["w3"].shape[1]
    d4 = prepped["w4"].shape[1]
    o1, o2, o3, o4 = 0, d1, d1 + d2, d1 + d2 + d3

    # Batch tile: multiple of 16 (bf16 vreg row packing), capped at tb_max.
    assert tb_max % BF16_SUBLANE == 0
    TB = min(tb_max, _round_up(B, BF16_SUBLANE))
    Bp = _round_up(B, TB)
    n_tiles = Bp // TB

    x_p = x
    if Bp != B:
        x_p = jnp.zeros((Bp, din), x.dtype).at[:B].set(x)

    def kernel(x_ref, w1_ref, w2_ref, w3_ref, w4_ref, b_ref, o_ref):
        # Cast x to bf16 on the VPU (free under the weight DMA / MXU work).
        h = jnp.dot(x_ref[...].astype(jnp.bfloat16), w1_ref[...],
                    preferred_element_type=jnp.float32)
        h = jnp.maximum(h + b_ref[:, o1:o1 + d1], 0.0)
        h = jnp.dot(h.astype(jnp.bfloat16), w2_ref[...],
                    preferred_element_type=jnp.float32)
        h = jnp.maximum(h + b_ref[:, o2:o2 + d2], 0.0)
        h = jnp.dot(h.astype(jnp.bfloat16), w3_ref[...],
                    preferred_element_type=jnp.float32)
        h = jnp.maximum(h + b_ref[:, o3:o3 + d3], 0.0)
        h = jnp.dot(h.astype(jnp.bfloat16), w4_ref[...],
                    preferred_element_type=jnp.float32)
        h = jnp.maximum(h + b_ref[:, o4:o4 + d4], 0.0)
        o_ref[...] = h.astype(o_ref.dtype)

    # x / out tiled over the batch grid; weights & bias resident across tiles.
    in_specs = [pl.BlockSpec((TB, din), lambda i: (i, 0))]          # x, f32
    for l in range(1, 5):
        in_specs.append(pl.BlockSpec(prepped[f"w{l}"].shape, lambda i: (0, 0)))
    in_specs.append(pl.BlockSpec(prepped["b_all"].shape, lambda i: (0, 0)))
    out_specs = pl.BlockSpec((TB, d4), lambda i: (i, 0))

    # For tiny grids, don't shard across v7x TensorCores: each core would
    # re-DMA its own copy of the resident weights (the dominant byte cost).
    semantics = ("arbitrary",) if n_tiles <= 4 else ("parallel",)

    weight_bytes = sum(prepped[f"w{l}"].size * 2 for l in range(1, 5))
    flops = 2 * Bp * sum(prepped[f"w{l}"].shape[0] * prepped[f"w{l}"].shape[1]
                         for l in range(1, 5))
    bytes_accessed = (x_p.size * 4 + weight_bytes + prepped["b_all"].size * 4
                      + Bp * d4 * jnp.dtype(out_dtype).itemsize)

    out = pl.pallas_call(
        kernel,
        out_shape=jax.ShapeDtypeStruct((Bp, d4), out_dtype),
        grid_spec=pltpu.PrefetchScalarGridSpec(
            num_scalar_prefetch=0,
            grid=(n_tiles,),
            in_specs=in_specs,
            out_specs=out_specs,
        ),
        compiler_params=pltpu.CompilerParams(
            dimension_semantics=semantics),
        cost_estimate=pl.CostEstimate(
            flops=flops, transcendentals=0, bytes_accessed=bytes_accessed),
    )(x_p,
      prepped["w1"], prepped["w2"], prepped["w3"], prepped["w4"],
      prepped["b_all"])

    return out[:B, :num_classes]


def reference_forward_f32(x, params):
    h = x
    for i in range(1, 5):
        h = jnp.maximum(h @ params[f"w{i}"] + params[f"b{i}"], 0.0)
    return h


def reference_forward_bf16(x, params, num_classes):
    """Emulates kernel numerics: bf16 dot inputs, f32 accumulate + bias + relu."""
    h = x.astype(jnp.bfloat16)
    h32 = None
    for i in range(1, 5):
        h32 = jnp.dot(h, params[f"w{i}"].astype(jnp.bfloat16),
                      preferred_element_type=jnp.float32)
        h32 = jnp.maximum(h32 + params[f"b{i}"], 0.0)
        h = h32.astype(jnp.bfloat16)
    return h32[:, :num_classes]


if __name__ == "__main__":
    input_size = 784   # flattened 28x28 image
    num_classes = 10
    batch = 8

    key = jax.random.PRNGKey(0)
    key, kx = jax.random.split(key)
    x = jax.random.normal(kx, (batch, input_size), jnp.float32)
    params = init_params(key, input_size, num_classes)
    prepped = prepare_params(params, input_size)

    out = nnh3_relu_forward(x, prepped, num_classes)
    out = jax.block_until_ready(out)
    assert out.shape == (batch, num_classes)

    # Tight check vs. a reference with identical (bf16-input, f32-acc) numerics.
    ref_bf16 = reference_forward_bf16(x, params, num_classes)
    assert jnp.allclose(out, ref_bf16, atol=1e-3, rtol=1e-3), (
        float(jnp.max(jnp.abs(out - ref_bf16))))

    # Loose sanity check vs. the pure-f32 reference (bf16 weight rounding).
    ref_f32 = reference_forward_f32(x, params)
    assert jnp.allclose(out, ref_f32, atol=5e-2, rtol=5e-2), (
        float(jnp.max(jnp.abs(out - ref_f32))))

    print("KERNEL_OK")
</pallas_src>

<mosaic_0001>
module attributes {stable_mosaic.version = 11 : i64} {
  func.func @kernel(%arg0: i32, %arg1: memref<16x784xf32, #tpu.memory_space<vmem>>, %arg2: memref<784x512xbf16, #tpu.memory_space<vmem>>, %arg3: memref<512x128xbf16, #tpu.memory_space<vmem>>, %arg4: memref<128x128xbf16, #tpu.memory_space<vmem>>, %arg5: memref<128x128xbf16, #tpu.memory_space<vmem>>, %arg6: memref<1x896xf32, #tpu.memory_space<vmem>>, %arg7: memref<16x128xf32, #tpu.memory_space<vmem>>) attributes {dimension_semantics = [#tpu.dimension_semantics<arbitrary>], iteration_bounds = array<i64: 1>, scalar_prefetch = 0 : i64, scratch_operands = 0 : i64, tpu.core_type = #tpu.core_type<tc>, window_params = [{transform_indices = @transform_0, window_bounds = array<i64: 16, 784>}, {pipeline_mode = #tpu.pipeline_mode<synchronous>, transform_indices = @transform_1, window_bounds = array<i64: 784, 512>}, {pipeline_mode = #tpu.pipeline_mode<synchronous>, transform_indices = @transform_2, window_bounds = array<i64: 512, 128>}, {pipeline_mode = #tpu.pipeline_mode<synchronous>, transform_indices = @transform_3, window_bounds = array<i64: 128, 128>}, {pipeline_mode = #tpu.pipeline_mode<synchronous>, transform_indices = @transform_4, window_bounds = array<i64: 128, 128>}, {pipeline_mode = #tpu.pipeline_mode<synchronous>, transform_indices = @transform_5, window_bounds = array<i64: 1, 896>}, {transform_indices = @transform_6, window_bounds = array<i64: 16, 128>}]} {
    %c0 = arith.constant 0 : index
    %c0_0 = arith.constant 0 : index
    %0 = vector.load %arg1[%c0, %c0_0] : memref<16x784xf32, #tpu.memory_space<vmem>>, vector<16x784xf32>
    %1 = arith.truncf %0 : vector<16x784xf32> to vector<16x784xbf16>
    %c0_1 = arith.constant 0 : index
    %c0_2 = arith.constant 0 : index
    %2 = vector.load %arg2[%c0_1, %c0_2] : memref<784x512xbf16, #tpu.memory_space<vmem>>, vector<784x512xbf16>
    %cst = arith.constant dense<0.000000e+00> : vector<16x512xf32>
    %3 = tpu.matmul %1, %2, %cst {dimension_numbers = #tpu.dot_dimension_numbers<[1], [0], [0], [1], [0, 0, 1, 1], [], []>} : vector<16x784xbf16>, vector<784x512xbf16>, vector<16x512xf32> -> vector<16x512xf32>
    %c0_3 = arith.constant 0 : index
    %c0_4 = arith.constant 0 : index
    %4 = vector.load %arg6[%c0_3, %c0_4] : memref<1x896xf32, #tpu.memory_space<vmem>>, vector<1x512xf32>
    %5 = vector.broadcast %4 : vector<1x512xf32> to vector<16x512xf32>
    %6 = arith.addf %3, %5 : vector<16x512xf32>
    %cst_5 = arith.constant 0.000000e+00 : f32
    %7 = vector.broadcast %cst_5 : f32 to vector<16x512xf32>
    %8 = arith.maximumf %6, %7 : vector<16x512xf32>
    %9 = arith.truncf %8 : vector<16x512xf32> to vector<16x512xbf16>
    %c0_6 = arith.constant 0 : index
    %c0_7 = arith.constant 0 : index
    %10 = vector.load %arg3[%c0_6, %c0_7] : memref<512x128xbf16, #tpu.memory_space<vmem>>, vector<512x128xbf16>
    %cst_8 = arith.constant dense<0.000000e+00> : vector<16x128xf32>
    %11 = tpu.matmul %9, %10, %cst_8 {dimension_numbers = #tpu.dot_dimension_numbers<[1], [0], [0], [1], [0, 0, 1, 1], [], []>} : vector<16x512xbf16>, vector<512x128xbf16>, vector<16x128xf32> -> vector<16x128xf32>
    %c0_9 = arith.constant 0 : index
    %c512 = arith.constant 512 : index
    %12 = vector.load %arg6[%c0_9, %c512] : memref<1x896xf32, #tpu.memory_space<vmem>>, vector<1x128xf32>
    %13 = vector.broadcast %12 : vector<1x128xf32> to vector<16x128xf32>
    %14 = arith.addf %11, %13 : vector<16x128xf32>
    %cst_10 = arith.constant 0.000000e+00 : f32
    %15 = vector.broadcast %cst_10 : f32 to vector<16x128xf32>
    %16 = arith.maximumf %14, %15 : vector<16x128xf32>
    %17 = arith.truncf %16 : vector<16x128xf32> to vector<16x128xbf16>
    %c0_11 = arith.constant 0 : index
    %c0_12 = arith.constant 0 : index
    %18 = vector.load %arg4[%c0_11, %c0_12] : memref<128x128xbf16, #tpu.memory_space<vmem>>, vector<128x128xbf16>
    %cst_13 = arith.constant dense<0.000000e+00> : vector<16x128xf32>
    %19 = tpu.matmul %17, %18, %cst_13 {dimension_numbers = #tpu.dot_dimension_numbers<[1], [0], [0], [1], [0, 0, 1, 1], [], []>} : vector<16x128xbf16>, vector<128x128xbf16>, vector<16x128xf32> -> vector<16x128xf32>
    %c0_14 = arith.constant 0 : index
    %c640 = arith.constant 640 : index
    %20 = vector.load %arg6[%c0_14, %c640] : memref<1x896xf32, #tpu.memory_space<vmem>>, vector<1x128xf32>
    %21 = vector.broadcast %20 : vector<1x128xf32> to vector<16x128xf32>
    %22 = arith.addf %19, %21 : vector<16x128xf32>
    %cst_15 = arith.constant 0.000000e+00 : f32
    %23 = vector.broadcast %cst_15 : f32 to vector<16x128xf32>
    %24 = arith.maximumf %22, %23 : vector<16x128xf32>
    %25 = arith.truncf %24 : vector<16x128xf32> to vector<16x128xbf16>
    %c0_16 = arith.constant 0 : index
    %c0_17 = arith.constant 0 : index
    %26 = vector.load %arg5[%c0_16, %c0_17] : memref<128x128xbf16, #tpu.memory_space<vmem>>, vector<128x128xbf16>
    %cst_18 = arith.constant dense<0.000000e+00> : vector<16x128xf32>
    %27 = tpu.matmul %25, %26, %cst_18 {dimension_numbers = #tpu.dot_dimension_numbers<[1], [0], [0], [1], [0, 0, 1, 1], [], []>} : vector<16x128xbf16>, vector<128x128xbf16>, vector<16x128xf32> -> vector<16x128xf32>
    %c0_19 = arith.constant 0 : index
    %c768 = arith.constant 768 : index
    %28 = vector.load %arg6[%c0_19, %c768] : memref<1x896xf32, #tpu.memory_space<vmem>>, vector<1x128xf32>
    %29 = vector.broadcast %28 : vector<1x128xf32> to vector<16x128xf32>
    %30 = arith.addf %27, %29 : vector<16x128xf32>
    %cst_20 = arith.constant 0.000000e+00 : f32
    %31 = vector.broadcast %cst_20 : f32 to vector<16x128xf32>
    %32 = arith.maximumf %30, %31 : vector<16x128xf32>
    %c0_21 = arith.constant 0 : index
    %c0_22 = arith.constant 0 : index
    %33 = vector.load %arg7[%c0_21, %c0_22] : memref<16x128xf32, #tpu.memory_space<vmem>>, vector<16x128xf32>
    tpu.vector_store %arg7[%c0_21, %c0_22], %32 {strides = array<i32>} : memref<16x128xf32, #tpu.memory_space<vmem>>, vector<16x128xf32>,
    return
  }
  func.func @transform_0(%arg0: i32) -> (i32, i32) {
    %c0_i32 = arith.constant 0 : i32
    %c0_i32_0 = arith.constant 0 : i32
    return %arg0, %c0_i32 : i32, i32
  }
  func.func @transform_1(%arg0: i32) -> (i32, i32) {
    %c0_i32 = arith.constant 0 : i32
    %c0_i32_0 = arith.constant 0 : i32
    %c0_i32_1 = arith.constant 0 : i32
    return %c0_i32, %c0_i32_0 : i32, i32
  }
  func.func @transform_2(%arg0: i32) -> (i32, i32) {
    %c0_i32 = arith.constant 0 : i32
    %c0_i32_0 = arith.constant 0 : i32
    %c0_i32_1 = arith.constant 0 : i32
    return %c0_i32, %c0_i32_0 : i32, i32
  }
  func.func @transform_3(%arg0: i32) -> (i32, i32) {
    %c0_i32 = arith.constant 0 : i32
    %c0_i32_0 = arith.constant 0 : i32
    %c0_i32_1 = arith.constant 0 : i32
    return %c0_i32, %c0_i32_0 : i32, i32
  }
  func.func @transform_4(%arg0: i32) -> (i32, i32) {
    %c0_i32 = arith.constant 0 : i32
    %c0_i32_0 = arith.constant 0 : i32
    %c0_i32_1 = arith.constant 0 : i32
    return %c0_i32, %c0_i32_0 : i32, i32
  }
  func.func @transform_5(%arg0: i32) -> (i32, i32) {
    %c0_i32 = arith.constant 0 : i32
    %c0_i32_0 = arith.constant 0 : i32
    %c0_i32_1 = arith.constant 0 : i32
    return %c0_i32, %c0_i32_0 : i32, i32
  }
  func.func @transform_6(%arg0: i32) -> (i32, i32) {
    %c0_i32 = arith.constant 0 : i32
    %c0_i32_0 = arith.constant 0 : i32
    return %arg0, %c0_i32 : i32, i32
  }
}

</mosaic_0001>

<bundles_post_ra>
// kernel: tpu_custom_call.1
= control target key start
LH: loop header
LB: loop body
LE: loop exit
PB: predicated region body
PF: predicated region fallthrough
CT: control target
= control target key end

     0   :  { %11 = vsyncpa [#allocation3], 0  ;;  %s3249_s0 = inlined_call_operand.hbm [shape: f32[16,784], index: 0, kind: input, shape index: {}]   ;;  %s3250_s1 = inlined_call_operand.hbm [shape: bf16[784,512], index: 1, kind: input, shape index: {}]   ;;  %s3251_s2 = inlined_call_operand.hbm [shape: bf16[512,128], index: 2, kind: input, shape index: {}]   ;;  %s3252_s3 = inlined_call_operand.hbm [shape: bf16[128,128], index: 3, kind: input, shape index: {}]   ;;  %s3253_s4 = inlined_call_operand.hbm [shape: bf16[128,128], index: 4, kind: input, shape index: {}]   ;;  %s3254_s5 = inlined_call_operand.vmem [shape: f32[1,896], index: 5, kind: input, shape index: {}]   ;;  %s3255_s6 = inlined_call_operand.hbm [shape: f32[16,128], index: 6, kind: output, shape index: {}]  }
   0x1   :  { %12 = vsyncpa [#allocation6], 0 }
   0x2   :  { %13 = vsyncpa [#allocation9], 0 }
   0x3   :  { %14 = vsyncpa [#allocation4], 0  ;;  %s3108_s21 = smov [#allocation5]  }
   0x4   :  { %s32_s22 = sshll.u32 %s3108_s21, 4  ;;  %s33_s22 = int_to_ptr.vmem [resolvable:$true] %s32_s22 }
   0x5   :  { %s2988_s23 = scalar_lea.vmem %s33_s22, 25088  ;;  %p2993_p1 = scmp.lt.s32.totalorder %s33_s22, %s33_s22 }
   0x6   :  { %p2989_p0 = scmp.ne.s32.totalorder %s33_s22, %s2988_s23  ;;  %p2994_p2 = scmp.lt.s32.totalorder %s2988_s23, %s2988_s23 }
   0x8   :  { %p2995_p3 = por %p2994_p2, %p2993_p1 }
   0xa   :  { %p2996_p4 = pnand %p2995_p3, %p2989_p0 }
   0xc   :  { %2999 = shalt.err (!%p2996_p4)
}
   0xd   :  { %s3109_s24 = smov 256   ;;  %s3110_s25 = smov 16  }
   0xe   :  { %38 = dma.hbm_to_vmem [thread:$0]  %s3250_s1, 25088, %s33_s22, [#allocation6], %s3109_s24, %s3109_s24, %s3110_s25  }
   0xf   :  { %s3111_s28 = smov [#allocation8]   ;;  %s3112_s30 = smov [#allocation2]  }
  0x10   :  { %s56_s29 = sshll.u32 %s3111_s28, 4  ;;  %s20_s7 = sshll.u32 %s3112_s30, 4  ;;  %s57_s29 = int_to_ptr.vmem [resolvable:$true] %s56_s29  ;;  %s21_s7 = int_to_ptr.vmem [resolvable:$true] %s20_s7 }
  0x11   :  { %s3008_s8 = scalar_lea.vmem %s57_s29, 1024  ;;  %p3013_p6 = scmp.lt.s32.totalorder %s57_s29, %s57_s29 }
  0x12   :  { %p3009_p5 = scmp.ne.s32.totalorder %s57_s29, %s3008_s8  ;;  %p3014_p7 = scmp.lt.s32.totalorder %s3008_s8, %s3008_s8 }
  0x14   :  { %p3015_p8 = por %p3014_p7, %p3013_p6 }
  0x16   :  { %p3016_p9 = pnand %p3015_p8, %p3009_p5 }
  0x18   :  { %3019 = shalt.err (!%p3016_p9)
}
  0x19   :  { %s3113_s9 = smov 64   ;;  %s3114_s10 = smov 4  }
  0x1a   :  { %62 = dma.hbm_to_vmem [thread:$0]  %s3252_s3, 1024, %s57_s29, [#allocation9], %s3113_s9, %s3113_s9, %s3114_s10  }
  0x1b   :  { %s3028_s1 = scalar_lea.vmem %s21_s7, 1792  ;;  %p3033_p11 = scmp.lt.s32.totalorder %s21_s7, %s21_s7 }
  0x1c   :  { %p3029_p10 = scmp.ne.s32.totalorder %s21_s7, %s3028_s1  ;;  %p3034_p12 = scmp.lt.s32.totalorder %s3028_s1, %s3028_s1 }
  0x1e   :  { %p3035_p13 = por %p3034_p12, %p3033_p11 }
  0x20   :  { %p3036_p0 = pnand %p3035_p13, %p3029_p10 }
  0x22   :  { %3039 = shalt.err (!%p3036_p0)
}
  0x23   :  { %s3115_s13 = smov 896   ;;  %s3116_s14 = smov 56  }
  0x24   :  { %26 = dma.hbm_to_vmem [thread:$0]  %s3249_s0, 1792, %s21_s7, [#allocation3], %s3115_s13, %s3115_s13, %s3116_s14  }
  0x25   :  { %s3117_s17 = smov [#allocation7]   ;;  %s3118_s19 = smov [#allocation10]  }
  0x26   :  { %s44_s18 = sshll.u32 %s3117_s17, 4  ;;  %s68_s20 = sshll.u32 %s3118_s19, 4  ;;  %s45_s18 = int_to_ptr.vmem [resolvable:$true] %s44_s18  ;;  %s69_s20 = int_to_ptr.vmem [resolvable:$true] %s68_s20 }
  0x27   :  { %s3048_s3 = scalar_lea.vmem %s45_s18, 4096  ;;  %p3053_p2 = scmp.lt.s32.totalorder %s45_s18, %s45_s18 }
  0x28   :  { %p3049_p1 = scmp.ne.s32.totalorder %s45_s18, %s3048_s3  ;;  %p3054_p3 = scmp.lt.s32.totalorder %s3048_s3, %s3048_s3 }
  0x2a   :  { %p3055_p4 = por %p3054_p3, %p3053_p2 }
  0x2c   :  { %p3056_p5 = pnand %p3055_p4, %p3049_p1 }
  0x2e   :  { %3059 = shalt.err (!%p3056_p5)
}
  0x2f   :  { %50 = dma.hbm_to_vmem [thread:$0]  %s3251_s2, 4096, %s45_s18, [#allocation6], %s3113_s9, %s3113_s9, %s3114_s10  }
  0x30   :  { %s3068_s0 = scalar_lea.vmem %s69_s20, 1024  ;;  %p3073_p7 = scmp.lt.s32.totalorder %s69_s20, %s69_s20 }
  0x31   :  { %p3069_p6 = scmp.ne.s32.totalorder %s69_s20, %s3068_s0  ;;  %p3074_p8 = scmp.lt.s32.totalorder %s3068_s0, %s3068_s0 }
  0x33   :  { %p3075_p9 = por %p3074_p8, %p3073_p7 }
  0x35   :  { %p3076_p10 = pnand %p3075_p9, %p3069_p6 }
  0x37   :  { %3079 = shalt.err (!%p3076_p10)
}
  0x38   :  { %74 = dma.hbm_to_vmem [thread:$0]  %s3253_s4, 1024, %s69_s20, [#allocation9], %s3113_s9, %s3113_s9, %s3114_s10  }
  0x39   :  { %3100 = dma.done.wait [#allocation3], 1792  }
  0x3a   :  { %3101 = vsyncadd [#allocation3], 4294965504 }
  0x3b   :  { %3102 = dma.done.wait [#allocation6], 29184  }
  0x3c   :  { %3103 = vsyncadd [#allocation6], 4294938112 }
  0x3d   :  { %3104 = dma.done.wait [#allocation9], 2048  }
  0x3e   :  { %3105 = vsyncadd [#allocation9], 4294965248  ;;  %v2638_v0 = vld [vmem:[#allocation5 + $0xe4] ss:$16 sps:$4 sm:$0xff]   ;;  %v2642_v2 = vld [vmem:[#allocation5 + $0xe0] ss:$16 sps:$4 sm:$0xff]  }
  0x3f   :  { %v2640_v1 = vld [vmem:[#allocation5 + $0x2e4] ss:$16 sps:$4 sm:$0xff]   ;;  %1316 = vmatprep.subr.bf16.mxu0 %v2638_v0  ;;  %v2643_v3 = vld [vmem:[#allocation5 + $0x2e0] ss:$16 sps:$4 sm:$0xff]   ;;  %v94_v46 = vld [vmem:[#allocation2 + $0x8] sm:$0xff]  ;;  %vm1312_vm0 = vcmask 130048  }
  0x40   :  { %1359 = vmatprep.subr.bf16.mxu1 %v2640_v1  ;;  %v2644_v4 = vld [vmem:[#allocation5 + $0xc4] ss:$16 sps:$4 sm:$0xff]   ;;  %1317 = vmatpush1.bf16.msra.mxu0 %v2642_v2  ;;  %v2648_v6 = vld [vmem:[#allocation5 + $0xc0] ss:$16 sps:$4 sm:$0xff]   ;;  %v96_v48 = vld [vmem:[#allocation2 + $0x18] sm:$0xff]  ;;  %vm3121_vm1 = vmmov 0  }
  0x41   :  { %1360 = vmatpush1.bf16.msra.mxu1 %v2643_v3  ;;  %v2646_v5 = vld [vmem:[#allocation5 + $0x2c4] ss:$16 sps:$4 sm:$0xff]   ;;  %1318 = vmatprep.subr.bf16.mxu0 %v2644_v4  ;;  %v2649_v7 = vld [vmem:[#allocation5 + $0x2c0] ss:$16 sps:$4 sm:$0xff]   ;;  %s3122_s7 = smov [#allocation11]  }
  0x42   :  { %1361 = vmatprep.subr.bf16.mxu1 %v2646_v5  ;;  %v2650_v8 = vld [vmem:[#allocation5 + $0xa4] ss:$16 sps:$4 sm:$0xff]   ;;  %v2654_v10 = vld [vmem:[#allocation5 + $0xa0] ss:$16 sps:$4 sm:$0xff]   ;;  %s2256_s8 = sshll.u32 %s3122_s7, 4  ;;  %s2257_s8 = int_to_ptr.vmem [resolvable:$true] %s2256_s8 }
  0x43   :  { %v2652_v9 = vld [vmem:[#allocation5 + $0x2a4] ss:$16 sps:$4 sm:$0xff]   ;;  %v2655_v11 = vld [vmem:[#allocation5 + $0x2a0] ss:$16 sps:$4 sm:$0xff]   ;;  %s3080_s9 = scalar_lea.vmem %s2257_s8, 256  ;;  %p3085_p12 = scmp.lt.s32.totalorder %s2257_s8, %s2257_s8 }
  0x44   :  { %1319 = vmatpush1.bf16.msra.mxu0 %v2648_v6  ;;  %v2656_v12 = vld [vmem:[#allocation5 + $0x84] ss:$16 sps:$4 sm:$0xff]   ;;  %v2660_v14 = vld [vmem:[#allocation5 + $0x80] ss:$16 sps:$4 sm:$0xff]   ;;  %p3081_p11 = scmp.ne.s32.totalorder %s2257_s8, %s3080_s9  ;;  %p3086_p13 = scmp.lt.s32.totalorder %s3080_s9, %s3080_s9 }
  0x45   :  { %1362 = vmatpush1.bf16.msra.mxu1 %v2649_v7  ;;  %1320 = vmatprep.subr.bf16.mxu0 %v2650_v8  ;;  %v2658_v13 = vld [vmem:[#allocation5 + $0x284] ss:$16 sps:$4 sm:$0xff]   ;;  %v2661_v15 = vld [vmem:[#allocation5 + $0x280] ss:$16 sps:$4 sm:$0xff]   ;;  %v100_v7 = vld [vmem:[#allocation2 + $0x38] sm:$0xff] }
  0x46   :  { %1363 = vmatprep.subr.bf16.mxu1 %v2652_v9  ;;  %v2662_v16 = vld [vmem:[#allocation5 + $0x64] ss:$16 sps:$4 sm:$0xff]   ;;  %v2666_v18 = vld [vmem:[#allocation5 + $0x60] ss:$16 sps:$4 sm:$0xff]   ;;  %v102_v9 = vld [vmem:[#allocation2 + $0x48] sm:$0xff]  ;;  %p3087_p0 = por %p3086_p13, %p3085_p12 }
  0x47   :  { %v2664_v17 = vld [vmem:[#allocation5 + $0x264] ss:$16 sps:$4 sm:$0xff]   ;;  %v2667_v19 = vld [vmem:[#allocation5 + $0x260] ss:$16 sps:$4 sm:$0xff]  }
  0x48   :  { %1321 = vmatpush1.bf16.msra.mxu0 %v2654_v10  ;;  %v2668_v20 = vld [vmem:[#allocation5 + $0x44] ss:$16 sps:$4 sm:$0xff]   ;;  %v2672_v22 = vld [vmem:[#allocation5 + $0x40] ss:$16 sps:$4 sm:$0xff]   ;;  %p3088_p1 = pnand %p3087_p0, %p3081_p11 }
  0x49   :  { %1364 = vmatpush1.bf16.msra.mxu1 %v2655_v11  ;;  %1322 = vmatprep.subr.bf16.mxu0 %v2656_v12  ;;  %v2670_v21 = vld [vmem:[#allocation5 + $0x244] ss:$16 sps:$4 sm:$0xff]   ;;  %v2673_v23 = vld [vmem:[#allocation5 + $0x240] ss:$16 sps:$4 sm:$0xff]  }
  0x4a   :  { %1365 = vmatprep.subr.bf16.mxu1 %v2658_v13  ;;  %v2674_v24 = vld [vmem:[#allocation5 + $0x24] ss:$16 sps:$4 sm:$0xff]   ;;  %v2678_v26 = vld [vmem:[#allocation5 + $0x20] ss:$16 sps:$4 sm:$0xff]  }
  0x4b   :  { %v2676_v25 = vld [vmem:[#allocation5 + $0x224] ss:$16 sps:$4 sm:$0xff]   ;;  %v2679_v27 = vld [vmem:[#allocation5 + $0x220] ss:$16 sps:$4 sm:$0xff]  }
  0x4c   :  { %1323 = vmatpush1.bf16.msra.mxu0 %v2660_v14  ;;  %v2680_v28 = vld [vmem:[#allocation5 + $0x4] ss:$16 sps:$4 sm:$0xff]   ;;  %v2684_v30 = vld [vmem:[#allocation5] ss:$16 sps:$4 sm:$0xff]  }
  0x4d   :  { %1366 = vmatpush1.bf16.msra.mxu1 %v2661_v15  ;;  %1324 = vmatprep.subr.bf16.mxu0 %v2662_v16  ;;  %v2682_v29 = vld [vmem:[#allocation5 + $0x204] ss:$16 sps:$4 sm:$0xff]   ;;  %v2685_v31 = vld [vmem:[#allocation5 + $0x200] ss:$16 sps:$4 sm:$0xff]  }
  0x4e   :  { %1367 = vmatprep.subr.bf16.mxu1 %v2664_v17  ;;  %v2686_v32 = vld [vmem:[#allocation5 + $0x1e4] ss:$16 sps:$4 sm:$0xff]   ;;  %v2690_v34 = vld [vmem:[#allocation5 + $0x1e0] ss:$16 sps:$4 sm:$0xff]   ;;  %v2745_v17 = vld [vmem:[#allocation5 + $0xec] ss:$16 sps:$4 sm:$0xff]  }
  0x4f   :  { %v2688_v33 = vld [vmem:[#allocation5 + $0x3e4] ss:$16 sps:$4 sm:$0xff]   ;;  %v2691_v35 = vld [vmem:[#allocation5 + $0x3e0] ss:$16 sps:$4 sm:$0xff]  }
  0x50   :  { %1325 = vmatpush1.bf16.msra.mxu0 %v2666_v18  ;;  %v2692_v36 = vld [vmem:[#allocation5 + $0x1c4] ss:$16 sps:$4 sm:$0xff]   ;;  %v2696_v38 = vld [vmem:[#allocation5 + $0x1c0] ss:$16 sps:$4 sm:$0xff]  }
  0x51   :  { %1368 = vmatpush1.bf16.msra.mxu1 %v2667_v19  ;;  %1326 = vmatprep.subr.bf16.mxu0 %v2668_v20  ;;  %v2694_v37 = vld [vmem:[#allocation5 + $0x3c4] ss:$16 sps:$4 sm:$0xff]   ;;  %v2697_v39 = vld [vmem:[#allocation5 + $0x3c0] ss:$16 sps:$4 sm:$0xff]   ;;  %v106_v20 = vld [vmem:[#allocation2 + $0x68] sm:$0xff] }
  0x52   :  { %1369 = vmatprep.subr.bf16.mxu1 %v2670_v21  ;;  %v2698_v40 = vld [vmem:[#allocation5 + $0x1a4] ss:$16 sps:$4 sm:$0xff]   ;;  %v2702_v42 = vld [vmem:[#allocation5 + $0x1a0] ss:$16 sps:$4 sm:$0xff]   ;;  %v3119_v21 = vmov 0  }
  0x53   :  { %v2700_v41 = vld [vmem:[#allocation5 + $0x3a4] ss:$16 sps:$4 sm:$0xff]   ;;  %v2703_v43 = vld [vmem:[#allocation5 + $0x3a0] ss:$16 sps:$4 sm:$0xff]  }
  0x54   :  { %1327 = vmatpush1.bf16.msra.mxu0 %v2672_v22  ;;  %v2704_v44 = vld [vmem:[#allocation5 + $0x184] ss:$16 sps:$4 sm:$0xff]   ;;  %v2708_v50 = vld [vmem:[#allocation5 + $0x180] ss:$16 sps:$4 sm:$0xff]  }
  0x55   :  { %1370 = vmatpush1.bf16.msra.mxu1 %v2673_v23  ;;  %1328 = vmatprep.subr.bf16.mxu0 %v2674_v24  ;;  %v2706_v45 = vld [vmem:[#allocation5 + $0x384] ss:$16 sps:$4 sm:$0xff]   ;;  %v2709_v51 = vld [vmem:[#allocation5 + $0x380] ss:$16 sps:$4 sm:$0xff]   ;;  %v2743_v24 = vld [vmem:[#allocation5 + $0xe8] ss:$16 sps:$4 sm:$0xff]  }
  0x56   :  { %1371 = vmatprep.subr.bf16.mxu1 %v2676_v25  ;;  %v101_v47 = vld [vmem:[#allocation2 + $0x40] sm:$0xff]  ;;  %v103_v49 = vld [vmem:[#allocation2 + $0x50] sm:$0xff] }
  0x57   :  { %v2710_v52 = vld [vmem:[#allocation5 + $0x164] ss:$16 sps:$4 sm:$0xff]   ;;  %v3184_v53 = vpack.c.bf16 %v101_v47, %v94_v46  ;;  %v3186_v54 = vpack.c.bf16 %v103_v49, %v96_v48  ;;  %v2714_v56 = vld [vmem:[#allocation5 + $0x160] ss:$16 sps:$4 sm:$0xff]   ;;  %v2773_v47 = vld [vmem:[#allocation5 + $0x48] ss:$16 sps:$4 sm:$0xff]  }
  0x58   :  { %1329 = vmatpush1.bf16.msra.mxu0 %v2678_v26  ;;  %v2712_v55 = vld [vmem:[#allocation5 + $0x364] ss:$16 sps:$4 sm:$0xff]   ;;  %v2715_v57 = vld [vmem:[#allocation5 + $0x360] ss:$16 sps:$4 sm:$0xff]   ;;  %v2751_v26 = vld [vmem:[#allocation5 + $0xcc] ss:$16 sps:$4 sm:$0xff]  }
  0x59   :  { %1372 = vmatpush1.bf16.msra.mxu1 %v2679_v27  ;;  %1330 = vmatprep.subr.bf16.mxu0 %v2680_v28  ;;  %v2716_v58 = vld [vmem:[#allocation5 + $0x144] ss:$16 sps:$4 sm:$0xff]   ;;  %v2720_v60 = vld [vmem:[#allocation5 + $0x140] ss:$16 sps:$4 sm:$0xff]   ;;  %v2749_v28 = vld [vmem:[#allocation5 + $0xc8] ss:$16 sps:$4 sm:$0xff]  }
  0x5a   :  { %1373 = vmatprep.subr.bf16.mxu1 %v2682_v29  ;;  %1348 = vmatprep.mubr.bf16.mxu0 %v3184_v53  ;;  %v2718_v59 = vld [vmem:[#allocation5 + $0x344] ss:$16 sps:$4 sm:$0xff]   ;;  %v2721_v61 = vld [vmem:[#allocation5 + $0x340] ss:$16 sps:$4 sm:$0xff]   ;;  %v2781_v49 = vld [vmem:[#allocation5 + $0x2c] ss:$16 sps:$4 sm:$0xff]  }
  0x5b   :  { %1391 = vmatprep.mubr.bf16.mxu1 %v3186_v54  ;;  %v2722_v62 = vld [vmem:[#allocation5 + $0x124] ss:$16 sps:$4 sm:$0xff]   ;;  %v2726_v0 = vld [vmem:[#allocation5 + $0x120] ss:$16 sps:$4 sm:$0xff]  }
  0x5c   :  { %1331 = vmatpush1.bf16.msra.mxu0 %v2684_v30  ;;  %v2724_v63 = vld [vmem:[#allocation5 + $0x324] ss:$16 sps:$4 sm:$0xff]   ;;  %v2727_v1 = vld [vmem:[#allocation5 + $0x320] ss:$16 sps:$4 sm:$0xff]   ;;  %v2757_v30 = vld [vmem:[#allocation5 + $0xac] ss:$16 sps:$4 sm:$0xff]  }
  0x5d   :  { %1374 = vmatpush1.bf16.msra.mxu1 %v2685_v31  ;;  %1332 = vmatprep.subr.bf16.mxu0 %v2686_v32  ;;  %v2728_v2 = vld [vmem:[#allocation5 + $0x104] ss:$16 sps:$4 sm:$0xff]   ;;  %v2732_v4 = vld [vmem:[#allocation5 + $0x100] ss:$16 sps:$4 sm:$0xff]   ;;  %v2755_v32 = vld [vmem:[#allocation5 + $0xa8] ss:$16 sps:$4 sm:$0xff]  }
  0x5e   :  { %1375 = vmatprep.subr.bf16.mxu1 %v2688_v33  ;;  %v2730_v3 = vld [vmem:[#allocation5 + $0x304] ss:$16 sps:$4 sm:$0xff]   ;;  %v2733_v5 = vld [vmem:[#allocation5 + $0x300] ss:$16 sps:$4 sm:$0xff]  }
  0x5f   :  { %v93_v6 = vld [vmem:[#allocation2] sm:$0xff]  ;;  %v95_v8 = vld [vmem:[#allocation2 + $0x10] sm:$0xff] }
  0x60   :  { %1333 = vmatpush2.bf16.msra.mxu0 %v2690_v34  ;;  %v2736_v10 = vld [vmem:[#allocation5 + $0x4e4] ss:$16 sps:$4 sm:$0xff]   ;;  %v3190_v12 = vpack.c.bf16 %v100_v7, %v93_v6  ;;  %v3192_v13 = vpack.c.bf16 %v102_v9, %v95_v8  ;;  %v2734_v14 = vld [vmem:[#allocation5 + $0x4e0] ss:$16 sps:$4 sm:$0xff]   ;;  %v2763_v34 = vld [vmem:[#allocation5 + $0x8c] ss:$16 sps:$4 sm:$0xff]  }
  0x61   :  { %1376 = vmatpush2.bf16.msra.mxu1 %v2691_v35  ;;  %1334 = vmatprep.subr.bf16.mxu0 %v2692_v36  ;;  %v2739_v11 = vld [vmem:[#allocation5 + $0x604] ss:$16 sps:$4 sm:$0xff]   ;;  %v2737_v15 = vld [vmem:[#allocation5 + $0x600] ss:$16 sps:$4 sm:$0xff]   ;;  %v2761_v36 = vld [vmem:[#allocation5 + $0x88] ss:$16 sps:$4 sm:$0xff]  }
  0x62   :  { %1377 = vmatprep.subr.bf16.mxu1 %v2694_v37  ;;  %v2742_v16 = vld [vmem:[#allocation5 + $0x4c4] ss:$16 sps:$4 sm:$0xff]   ;;  %v2740_v18 = vld [vmem:[#allocation5 + $0x4c0] ss:$16 sps:$4 sm:$0xff]   ;;  %v2811_v6 = vld [vmem:[#allocation5 + $0x18c] ss:$16 sps:$4 sm:$0xff]  }
  0x63   :  { %v99_v19 = vld [vmem:[#allocation2 + $0x30] sm:$0xff]  ;;  %v2809_v8 = vld [vmem:[#allocation5 + $0x188] ss:$16 sps:$4 sm:$0xff]  }
  0x64   :  { %1335 = vmatpush2.bf16.msra.mxu0 %v2696_v38  ;;  %v2748_v22 = vld [vmem:[#allocation5 + $0x4a4] ss:$16 sps:$4 sm:$0xff]   ;;  %v3197_v23 = vpack.c.bf16 %v106_v20, %v99_v19  ;;  %v2746_v25 = vld [vmem:[#allocation5 + $0x4a0] ss:$16 sps:$4 sm:$0xff]   ;;  %v2769_v38 = vld [vmem:[#allocation5 + $0x6c] ss:$16 sps:$4 sm:$0xff]  }
  0x65   :  { %1378 = vmatpush2.bf16.msra.mxu1 %v2697_v39  ;;  %1336 = vmatprep.subr.bf16.mxu0 %v2698_v40  ;;  %v2754_v27 = vld [vmem:[#allocation5 + $0x484] ss:$16 sps:$4 sm:$0xff]   ;;  %v2752_v29 = vld [vmem:[#allocation5 + $0x480] ss:$16 sps:$4 sm:$0xff]   ;;  %v2767_v40 = vld [vmem:[#allocation5 + $0x68] ss:$16 sps:$4 sm:$0xff]  }
  0x66   :  { %1379 = vmatprep.subr.bf16.mxu1 %v2700_v41  ;;  %v2760_v31 = vld [vmem:[#allocation5 + $0x464] ss:$16 sps:$4 sm:$0xff]   ;;  %v2758_v33 = vld [vmem:[#allocation5 + $0x460] ss:$16 sps:$4 sm:$0xff]   ;;  %v98_v41 = vld [vmem:[#allocation2 + $0x28] sm:$0xff] }
  0x67   :  { %v2766_v35 = vld [vmem:[#allocation5 + $0x444] ss:$16 sps:$4 sm:$0xff]   ;;  %v2764_v37 = vld [vmem:[#allocation5 + $0x440] ss:$16 sps:$4 sm:$0xff]  }
  0x68   :  { %1337 = vmatpush2.bf16.msra.mxu0 %v2702_v42  ;;  %v2772_v39 = vld [vmem:[#allocation5 + $0x424] ss:$16 sps:$4 sm:$0xff]   ;;  %v2776_v48 = vld [vmem:[#allocation5 + $0x400] ss:$16 sps:$4 sm:$0xff]  }
  0x69   :  { %1380 = vmatpush2.bf16.msra.mxu1 %v2703_v43  ;;  %1338 = vmatprep.subr.bf16.mxu0 %v2704_v44  ;;  %v105_v42 = vld [vmem:[#allocation2 + $0x60] sm:$0xff] }
  0x6a   :  { %1381 = vmatprep.subr.bf16.mxu1 %v2706_v45  ;;  %v2770_v43 = vld [vmem:[#allocation5 + $0x420] ss:$16 sps:$4 sm:$0xff]   ;;  %v3202_v44 = vpack.c.bf16 %v105_v42, %v98_v41  ;;  %v2775_v45 = vld [vmem:[#allocation5 + $0x4c] ss:$16 sps:$4 sm:$0xff]   ;;  %v2778_v46 = vld [vmem:[#allocation5 + $0x404] ss:$16 sps:$4 sm:$0xff]  }
  0x6b   :  { %v2814_v7 = vld [vmem:[#allocation5 + $0x544] ss:$16 sps:$4 sm:$0xff]   ;;  %v2812_v9 = vld [vmem:[#allocation5 + $0x540] ss:$16 sps:$4 sm:$0xff]   ;;  %v2853_v41 = vld [vmem:[#allocation5 + $0x4ac] ss:$16 sps:$4 sm:$0xff]  }
  0x6c   :  { %1339 = vmatpush2.bf16.msra.mxu0 %v2708_v50  ;;  %v2784_v50 = vld [vmem:[#allocation5 + $0x5e4] ss:$16 sps:$4 sm:$0xff]   ;;  %v2824_v19 = vld [vmem:[#allocation5 + $0x500] ss:$16 sps:$4 sm:$0xff]   ;;  %v2856_v42 = vld [vmem:[#allocation5 + $0x26c] ss:$16 sps:$4 sm:$0xff]  }
  0x6d   :  { %1382 = vmatpush2.bf16.msra.mxu1 %v2709_v51  ;;  %1340 = vmatprep.subr.bf16.mxu0 %v2710_v52  ;;  %v2779_v51 = vld [vmem:[#allocation5 + $0x28] ss:$16 sps:$4 sm:$0xff]   ;;  %v2782_v52 = vld [vmem:[#allocation5 + $0x5e0] ss:$16 sps:$4 sm:$0xff]  }
  0x6e   :  { %1383 = vmatprep.subr.bf16.mxu1 %v2712_v55  ;;  %v2790_v55 = vld [vmem:[#allocation5 + $0x5c4] ss:$16 sps:$4 sm:$0xff]  }
  0x6f   :  { %v97_v20 = vld [vmem:[#allocation2 + $0x20] sm:$0xff] }
  0x70   :  { %1341 = vmatpush2.bf16.msra.mxu0 %v2714_v56  ;;  %v2785_v56 = vld [vmem:[#allocation5 + $0x8] ss:$16 sps:$4 sm:$0xff]  }
  0x71   :  { %1384 = vmatpush2.bf16.msra.mxu1 %v2715_v57  ;;  %1342 = vmatprep.subr.bf16.mxu0 %v2716_v58  ;;  %v2788_v57 = vld [vmem:[#allocation5 + $0x5c0] ss:$16 sps:$4 sm:$0xff]   ;;  %v2793_v58 = vld [vmem:[#allocation5 + $0x1ec] ss:$16 sps:$4 sm:$0xff]  }
  0x72   :  { %1385 = vmatprep.subr.bf16.mxu1 %v2718_v59  ;;  %v2796_v59 = vld [vmem:[#allocation5 + $0x5a4] ss:$16 sps:$4 sm:$0xff]  }
  0x74   :  { %1343 = vmatpush2.bf16.msra.mxu0 %v2720_v60  ;;  %v2791_v60 = vld [vmem:[#allocation5 + $0x1e8] ss:$16 sps:$4 sm:$0xff]  }
  0x75   :  { %1386 = vmatpush2.bf16.msra.mxu1 %v2721_v61  ;;  %1344 = vmatprep.subr.bf16.mxu0 %v2722_v62  ;;  %v2794_v61 = vld [vmem:[#allocation5 + $0x5a0] ss:$16 sps:$4 sm:$0xff]   ;;  %v2799_v62 = vld [vmem:[#allocation5 + $0x1cc] ss:$16 sps:$4 sm:$0xff]  }
  0x76   :  { %1387 = vmatprep.subr.bf16.mxu1 %v2724_v63  ;;  %v2802_v63 = vld [vmem:[#allocation5 + $0x584] ss:$16 sps:$4 sm:$0xff]  }
  0x78   :  { %1345 = vmatpush2.bf16.msra.mxu0 %v2726_v0  ;;  %v2797_v0 = vld [vmem:[#allocation5 + $0x1c8] ss:$16 sps:$4 sm:$0xff]  }
  0x79   :  { %1388 = vmatpush2.bf16.msra.mxu1 %v2727_v1  ;;  %1346 = vmatprep.subr.bf16.mxu0 %v2728_v2  ;;  %v2800_v1 = vld [vmem:[#allocation5 + $0x580] ss:$16 sps:$4 sm:$0xff]   ;;  %v2805_v2 = vld [vmem:[#allocation5 + $0x1ac] ss:$16 sps:$4 sm:$0xff]  }
  0x7a   :  { %1389 = vmatprep.subr.bf16.mxu1 %v2730_v3  ;;  %v2808_v3 = vld [vmem:[#allocation5 + $0x564] ss:$16 sps:$4 sm:$0xff]  }
  0x7c   :  { %1347 = vmatpush2.bf16.msra.mxu0 %v2732_v4  ;;  %v2803_v4 = vld [vmem:[#allocation5 + $0x1a8] ss:$16 sps:$4 sm:$0xff]  }
  0x7d   :  { %1390 = vmatpush2.bf16.msra.mxu1 %v2733_v5  ;;  %1402 = vmatprep.subr.bf16.mxu0 %v2736_v10  ;;  %v2806_v5 = vld [vmem:[#allocation5 + $0x560] ss:$16 sps:$4 sm:$0xff]   ;;  %v2817_v10 = vld [vmem:[#allocation5 + $0x16c] ss:$16 sps:$4 sm:$0xff]  }
  0x7e   :  { %1459 = vmatprep.subr.bf16.mxu1 %v2739_v11  ;;  %v2820_v11 = vld [vmem:[#allocation5 + $0x524] ss:$16 sps:$4 sm:$0xff]  }
  0x7f   :  { %1349 = vmatmul.mubr.bf16.vlgmr.msra.gmra.mxu0 %v3190_v12 }
  0x80   :  { %1392 = vmatmul.mubr.bf16.vlgmr.msra.gmra.mxu1 %v3192_v13  ;;  %1403 = vmatpush1.bf16.msra.mxu0 %v2734_v14  ;;  %v2815_v14 = vld [vmem:[#allocation5 + $0x168] ss:$16 sps:$4 sm:$0xff]  }
  0x81   :  { %1460 = vmatpush1.bf16.msra.mxu1 %v2737_v15  ;;  %1404 = vmatprep.subr.bf16.mxu0 %v2742_v16  ;;  %v2818_v15 = vld [vmem:[#allocation5 + $0x520] ss:$16 sps:$4 sm:$0xff]   ;;  %v2823_v16 = vld [vmem:[#allocation5 + $0x14c] ss:$16 sps:$4 sm:$0xff]  }
  0x82   :  { %1477 = vmatprep.mubr.bf16.mxu1 %v3119_v21  ;;  %1488 = vmatprep.subr.bf16.mxu1 %v2745_v17  ;;  %v2826_v17 = vld [vmem:[#allocation5 + $0x504] ss:$16 sps:$4 sm:$0xff]  }
  0x83   :  { %1434 = vmatprep.mubr.bf16.mxu0 %v3202_v44 }
  0x84   :  { %1405 = vmatpush1.bf16.msra.mxu0 %v2740_v18  ;;  %v2821_v18 = vld [vmem:[#allocation5 + $0x148] ss:$16 sps:$4 sm:$0xff]  }
  0x85   :  { %1406 = vmatprep.subr.bf16.mxu0 %v2748_v22  ;;  %v104_v22 = vld [vmem:[#allocation2 + $0x58] sm:$0xff] }
  0x88   :  { %2466 = vmatmul.mubr.msk.bf16.vlgmr.msra.gmra.mxu1 %vm1312_vm0, %v3197_v23  ;;  %1407 = vmatpush1.bf16.msra.mxu0 %v2746_v25  ;;  %v2832_v25 = vld [vmem:[#allocation5 + $0x2ec] ss:$16 sps:$4 sm:$0xff]  }
  0x89   :  { %1489 = vmatpush1.bf16.msra.mxu1 %v2743_v24  ;;  %1408 = vmatprep.subr.bf16.mxu0 %v2754_v27  ;;  %v2829_v24 = vld [vmem:[#allocation5 + $0x12c] ss:$16 sps:$4 sm:$0xff]   ;;  %v2827_v27 = vld [vmem:[#allocation5 + $0x128] ss:$16 sps:$4 sm:$0xff]  }
  0x8a   :  { %1490 = vmatprep.subr.bf16.mxu1 %v2751_v26  ;;  %1520 = vmatprep.mubr.bf16.mxu1 %v3184_v53  ;;  %v2787_v53 = vld [vmem:[#allocation5 + $0xc] ss:$16 sps:$4 sm:$0xff]   ;;  %v3205_v26 = vpack.c.bf16 %v104_v22, %v97_v20  ;;  %v2911_v20 = vld [vmem:[#allocation5 + $0x568] ss:$16 sps:$4 sm:$0xff]  }
  0x8b   :  { %v2914_v22 = vld [vmem:[#allocation5 + $0x328] ss:$16 sps:$4 sm:$0xff]  }
  0x8c   :  { %1409 = vmatpush1.bf16.msra.mxu0 %v2752_v29  ;;  %v2835_v29 = vld [vmem:[#allocation5 + $0x10c] ss:$16 sps:$4 sm:$0xff]  }
  0x8d   :  { %1491 = vmatpush1.bf16.msra.mxu1 %v2749_v28  ;;  %1410 = vmatprep.subr.bf16.mxu0 %v2760_v31  ;;  %v2830_v28 = vld [vmem:[#allocation5 + $0x2e8] ss:$16 sps:$4 sm:$0xff]  }
  0x8e   :  { %1492 = vmatprep.subr.bf16.mxu1 %v2757_v30  ;;  %v2838_v30 = vld [vmem:[#allocation5 + $0x2cc] ss:$16 sps:$4 sm:$0xff]   ;;  %v2833_v31 = vld [vmem:[#allocation5 + $0x108] ss:$16 sps:$4 sm:$0xff]  }
  0x90   :  { %1411 = vmatpush1.bf16.msra.mxu0 %v2758_v33  ;;  %v2841_v33 = vld [vmem:[#allocation5 + $0x4ec] ss:$16 sps:$4 sm:$0xff]  }
  0x91   :  { %1493 = vmatpush1.bf16.msra.mxu1 %v2755_v32  ;;  %1412 = vmatprep.subr.bf16.mxu0 %v2766_v35  ;;  %v2836_v32 = vld [vmem:[#allocation5 + $0x2c8] ss:$16 sps:$4 sm:$0xff]  }
  0x92   :  { %1494 = vmatprep.subr.bf16.mxu1 %v2763_v34  ;;  %v2844_v34 = vld [vmem:[#allocation5 + $0x2ac] ss:$16 sps:$4 sm:$0xff]   ;;  %v2839_v35 = vld [vmem:[#allocation5 + $0x4e8] ss:$16 sps:$4 sm:$0xff]  }
  0x94   :  { %1413 = vmatpush1.bf16.msra.mxu0 %v2764_v37  ;;  %v2847_v37 = vld [vmem:[#allocation5 + $0x4cc] ss:$16 sps:$4 sm:$0xff]  }
  0x95   :  { %1495 = vmatpush1.bf16.msra.mxu1 %v2761_v36  ;;  %1414 = vmatprep.subr.bf16.mxu0 %v2772_v39  ;;  %v2842_v36 = vld [vmem:[#allocation5 + $0x2a8] ss:$16 sps:$4 sm:$0xff]  }
  0x96   :  { %1496 = vmatprep.subr.bf16.mxu1 %v2769_v38  ;;  %v2850_v38 = vld [vmem:[#allocation5 + $0x28c] ss:$16 sps:$4 sm:$0xff]   ;;  %v2845_v39 = vld [vmem:[#allocation5 + $0x4c8] ss:$16 sps:$4 sm:$0xff]  }
  0x98   :  { %1415 = vmatpush1.bf16.msra.mxu0 %v2770_v43  ;;  %v2851_v43 = vld [vmem:[#allocation5 + $0x4a8] ss:$16 sps:$4 sm:$0xff]  }
  0x99   :  { %1497 = vmatpush1.bf16.msra.mxu1 %v2767_v40  ;;  %1416 = vmatprep.subr.bf16.mxu0 %v2778_v46  ;;  %v2848_v40 = vld [vmem:[#allocation5 + $0x288] ss:$16 sps:$4 sm:$0xff]   ;;  %v2862_v46 = vld [vmem:[#allocation5 + $0x24c] ss:$16 sps:$4 sm:$0xff]  }
  0x9a   :  { %1498 = vmatprep.subr.bf16.mxu1 %v2775_v45  ;;  %v2854_v45 = vld [vmem:[#allocation5 + $0x268] ss:$16 sps:$4 sm:$0xff]  }
  0x9c   :  { %1417 = vmatpush1.bf16.msra.mxu0 %v2776_v48  ;;  %v2860_v48 = vld [vmem:[#allocation5 + $0x248] ss:$16 sps:$4 sm:$0xff]  }
  0x9d   :  { %1499 = vmatpush1.bf16.msra.mxu1 %v2773_v47  ;;  %1418 = vmatprep.subr.bf16.mxu0 %v2784_v50  ;;  %v2857_v47 = vld [vmem:[#allocation5 + $0x488] ss:$16 sps:$4 sm:$0xff]  }
  0x9e   :  { %1500 = vmatprep.subr.bf16.mxu1 %v2781_v49  ;;  %v2865_v49 = vld [vmem:[#allocation5 + $0x46c] ss:$16 sps:$4 sm:$0xff]   ;;  %v2863_v50 = vld [vmem:[#allocation5 + $0x468] ss:$16 sps:$4 sm:$0xff]  }
  0xa0   :  { %1419 = vmatpush2.bf16.msra.mxu0 %v2782_v52  ;;  %v2871_v52 = vld [vmem:[#allocation5 + $0x44c] ss:$16 sps:$4 sm:$0xff]  }
  0xa1   :  { %1501 = vmatpush1.bf16.msra.mxu1 %v2779_v51  ;;  %1420 = vmatprep.subr.bf16.mxu0 %v2790_v55  ;;  %v2866_v51 = vld [vmem:[#allocation5 + $0x228] ss:$16 sps:$4 sm:$0xff]  }
  0xa2   :  { %1502 = vmatprep.subr.bf16.mxu1 %v2787_v53  ;;  %v2874_v53 = vld [vmem:[#allocation5 + $0x20c] ss:$16 sps:$4 sm:$0xff]   ;;  %v2872_v55 = vld [vmem:[#allocation5 + $0x208] ss:$16 sps:$4 sm:$0xff]  }
  0xa4   :  { %1421 = vmatpush2.bf16.msra.mxu0 %v2788_v57  ;;  %v2880_v57 = vld [vmem:[#allocation5 + $0x3ec] ss:$16 sps:$4 sm:$0xff]  }
  0xa5   :  { %1503 = vmatpush1.bf16.msra.mxu1 %v2785_v56  ;;  %1422 = vmatprep.subr.bf16.mxu0 %v2796_v59  ;;  %v2877_v56 = vld [vmem:[#allocation5 + $0x42c] ss:$16 sps:$4 sm:$0xff]   ;;  %v2878_v59 = vld [vmem:[#allocation5 + $0x3e8] ss:$16 sps:$4 sm:$0xff]  }
  0xa6   :  { %1504 = vmatprep.subr.bf16.mxu1 %v2793_v58  ;;  %v2875_v58 = vld [vmem:[#allocation5 + $0x428] ss:$16 sps:$4 sm:$0xff]  }
  0xa8   :  { %1423 = vmatpush2.bf16.msra.mxu0 %v2794_v61  ;;  %v2886_v61 = vld [vmem:[#allocation5 + $0x3cc] ss:$16 sps:$4 sm:$0xff]  }
  0xa9   :  { %1505 = vmatpush2.bf16.msra.mxu1 %v2791_v60  ;;  %1424 = vmatprep.subr.bf16.mxu0 %v2802_v63  ;;  %v2883_v60 = vld [vmem:[#allocation5 + $0x40c] ss:$16 sps:$4 sm:$0xff]   ;;  %v2884_v63 = vld [vmem:[#allocation5 + $0x3c8] ss:$16 sps:$4 sm:$0xff]  }
  0xaa   :  { %1506 = vmatprep.subr.bf16.mxu1 %v2799_v62  ;;  %v2881_v62 = vld [vmem:[#allocation5 + $0x408] ss:$16 sps:$4 sm:$0xff]  }
  0xac   :  { %1425 = vmatpush2.bf16.msra.mxu0 %v2800_v1  ;;  %v2892_v1 = vld [vmem:[#allocation5 + $0x3ac] ss:$16 sps:$4 sm:$0xff]  }
  0xad   :  { %1507 = vmatpush2.bf16.msra.mxu1 %v2797_v0  ;;  %1426 = vmatprep.subr.bf16.mxu0 %v2808_v3  ;;  %v2889_v0 = vld [vmem:[#allocation5 + $0x5ec] ss:$16 sps:$4 sm:$0xff]   ;;  %v2890_v3 = vld [vmem:[#allocation5 + $0x3a8] ss:$16 sps:$4 sm:$0xff]  }
  0xae   :  { %1508 = vmatprep.subr.bf16.mxu1 %v2805_v2  ;;  %v2887_v2 = vld [vmem:[#allocation5 + $0x5e8] ss:$16 sps:$4 sm:$0xff]  }
  0xb0   :  { %1427 = vmatpush2.bf16.msra.mxu0 %v2806_v5  ;;  %v2898_v5 = vld [vmem:[#allocation5 + $0x38c] ss:$16 sps:$4 sm:$0xff]  }
  0xb1   :  { %1509 = vmatpush2.bf16.msra.mxu1 %v2803_v4  ;;  %1428 = vmatprep.subr.bf16.mxu0 %v2814_v7  ;;  %v2895_v4 = vld [vmem:[#allocation5 + $0x5cc] ss:$16 sps:$4 sm:$0xff]   ;;  %v2896_v7 = vld [vmem:[#allocation5 + $0x388] ss:$16 sps:$4 sm:$0xff]  }
  0xb2   :  { %1510 = vmatprep.subr.bf16.mxu1 %v2811_v6  ;;  %v2893_v6 = vld [vmem:[#allocation5 + $0x5c8] ss:$16 sps:$4 sm:$0xff]  }
  0xb4   :  { %1429 = vmatpush2.bf16.msra.mxu0 %v2812_v9  ;;  %v2904_v9 = vld [vmem:[#allocation5 + $0x36c] ss:$16 sps:$4 sm:$0xff]  }
  0xb5   :  { %1511 = vmatpush2.bf16.msra.mxu1 %v2809_v8  ;;  %1430 = vmatprep.subr.bf16.mxu0 %v2820_v11  ;;  %v2901_v8 = vld [vmem:[#allocation5 + $0x5ac] ss:$16 sps:$4 sm:$0xff]   ;;  %v2902_v11 = vld [vmem:[#allocation5 + $0x368] ss:$16 sps:$4 sm:$0xff]  }
  0xb6   :  { %1512 = vmatprep.subr.bf16.mxu1 %v2817_v10  ;;  %v2899_v10 = vld [vmem:[#allocation5 + $0x5a8] ss:$16 sps:$4 sm:$0xff]  }
  0xb8   :  { %1431 = vmatpush2.bf16.msra.mxu0 %v2818_v15  ;;  %v2910_v15 = vld [vmem:[#allocation5 + $0x34c] ss:$16 sps:$4 sm:$0xff]  }
  0xb9   :  { %1513 = vmatpush2.bf16.msra.mxu1 %v2815_v14  ;;  %1432 = vmatprep.subr.bf16.mxu0 %v2826_v17  ;;  %v2907_v14 = vld [vmem:[#allocation5 + $0x58c] ss:$16 sps:$4 sm:$0xff]   ;;  %v2908_v17 = vld [vmem:[#allocation5 + $0x348] ss:$16 sps:$4 sm:$0xff]  }
  0xba   :  { %1514 = vmatprep.subr.bf16.mxu1 %v2823_v16  ;;  %v2905_v16 = vld [vmem:[#allocation5 + $0x588] ss:$16 sps:$4 sm:$0xff]  }
  0xbc   :  { %1433 = vmatpush2.bf16.msra.mxu0 %v2824_v19  ;;  %v2916_v19 = vld [vmem:[#allocation5 + $0x32c] ss:$16 sps:$4 sm:$0xff]  }
  0xbd   :  { %1515 = vmatpush2.bf16.msra.mxu1 %v2821_v18  ;;  %1531 = vmatprep.subr.bf16.mxu0 %v2832_v25  ;;  %v2913_v18 = vld [vmem:[#allocation5 + $0x56c] ss:$16 sps:$4 sm:$0xff]  }
  0xbe   :  { %1516 = vmatprep.subr.bf16.mxu1 %v2829_v24  ;;  %v2919_v24 = vld [vmem:[#allocation5 + $0x54c] ss:$16 sps:$4 sm:$0xff]  }
  0xbf   :  { %1435 = vmatmul.mubr.bf16.vlgmr.msra.gmra.mxu0 %v3205_v26  ;;  %v2922_v25 = vld [vmem:[#allocation5 + $0x30c] ss:$16 sps:$4 sm:$0xff]  }
  0xc0   :  { %1532 = vmatpush1.bf16.msra.mxu0 %v2830_v28  ;;  %1563 = vmatprep.mubr.bf16.mxu0 %v3186_v54  ;;  %v2859_v54 = vld [vmem:[#allocation5 + $0x48c] ss:$16 sps:$4 sm:$0xff]   ;;  %v2920_v28 = vld [vmem:[#allocation5 + $0x308] ss:$16 sps:$4 sm:$0xff]  }
  0xc1   :  { %1517 = vmatpush2.bf16.msra.mxu1 %v2827_v27  ;;  %1533 = vmatprep.subr.bf16.mxu0 %v2838_v30  ;;  %v2917_v27 = vld [vmem:[#allocation5 + $0x548] ss:$16 sps:$4 sm:$0xff]   ;;  %v2928_v30 = vld [vmem:[#allocation5 + $0x60c] ss:$16 sps:$4 sm:$0xff]  }
  0xc2   :  { %1518 = vmatprep.subr.bf16.mxu1 %v2835_v29  ;;  %v2925_v29 = vld [vmem:[#allocation5 + $0x52c] ss:$16 sps:$4 sm:$0xff]  }
  0xc4   :  { %1534 = vmatpush1.bf16.msra.mxu0 %v2836_v32  ;;  %v2926_v32 = vld [vmem:[#allocation5 + $0x608] ss:$16 sps:$4 sm:$0xff]  }
  0xc5   :  { %1519 = vmatpush2.bf16.msra.mxu1 %v2833_v31  ;;  %1535 = vmatprep.subr.bf16.mxu0 %v2844_v34  ;;  %v2923_v31 = vld [vmem:[#allocation5 + $0x528] ss:$16 sps:$4 sm:$0xff]  }
  0xc6   :  { %1574 = vmatprep.subr.bf16.mxu1 %v2841_v33  ;;  %v2931_v33 = vld [vmem:[#allocation5 + $0x50c] ss:$16 sps:$4 sm:$0xff]  }
  0xc7   :  { %v2932_v34 = vld [vmem:[#allocation7 + $0x78] sm:$0xff]  }
  0xc8   :  { %1521 = vmatmul.mubr.bf16.vlgmr.msra.gmra.mxu1 %v3190_v12  ;;  %1536 = vmatpush1.bf16.msra.mxu0 %v2842_v36  ;;  %v2868_v12 = vld [vmem:[#allocation5 + $0x22c] ss:$16 sps:$4 sm:$0xff]  }
  0xc9   :  { %1575 = vmatpush1.bf16.msra.mxu1 %v2839_v35  ;;  %1537 = vmatprep.subr.bf16.mxu0 %v2850_v38  ;;  %v2929_v35 = vld [vmem:[#allocation5 + $0x508] ss:$16 sps:$4 sm:$0xff]   ;;  %v2935_v38 = vld [vmem:[#allocation7 + $0x30] sm:$0xff]  }
  0xca   :  { %1576 = vmatprep.subr.bf16.mxu1 %v2847_v37  ;;  %1606 = vmatprep.mubr.bf16.mxu1 %v3202_v44  ;;  %v2869_v44 = vld [vmem:[#allocation5 + $0x448] ss:$16 sps:$4 sm:$0xff]   ;;  %v2934_v37 = vld [vmem:[#allocation7 + $0x70] sm:$0xff]  }
  0xcb   :  { %v2933_v36 = vld [vmem:[#allocation7 + $0x38] sm:$0xff]  }
  0xcc   :  { %1538 = vmatpush1.bf16.msra.mxu0 %v2848_v40  ;;  %v2938_v40 = vld [vmem:[#allocation7 + $0x60] sm:$0xff]  }
  0xcd   :  { %1577 = vmatpush1.bf16.msra.mxu1 %v2845_v39  ;;  %1539 = vmatprep.subr.bf16.mxu0 %v2856_v42  ;;  %v2936_v39 = vld [vmem:[#allocation7 + $0x68] sm:$0xff]   ;;  %v2949_v42 = vld [vmem:[#allocation7 + $0xb8] sm:$0xff]  }
  0xce   :  { %1578 = vmatprep.subr.bf16.mxu1 %v2853_v41  ;;  %v2948_v41 = vld [vmem:[#allocation7 + $0xf8] sm:$0xff]  }
  0xd0   :  { %1540 = vmatpush1.bf16.msra.mxu0 %v2854_v45  ;;  %v2940_v45 = vld [vmem:[#allocation7 + $0x58] sm:$0xff]  }
  0xd1   :  { %1579 = vmatpush1.bf16.msra.mxu1 %v2851_v43  ;;  %1541 = vmatprep.subr.bf16.mxu0 %v2862_v46  ;;  %v2939_v43 = vld [vmem:[#allocation7 + $0x20] sm:$0xff]   ;;  %v2942_v46 = vld [vmem:[#allocation7 + $0x50] sm:$0xff]  }
  0xd2   :  { %1580 = vmatprep.subr.bf16.mxu1 %v2859_v54  ;;  %v2941_v54 = vld [vmem:[#allocation7 + $0x18] sm:$0xff]  }
  0xd4   :  { %1542 = vmatpush1.bf16.msra.mxu0 %v2860_v48  ;;  %v2944_v48 = vld [vmem:[#allocation7 + $0x48] sm:$0xff]  }
  0xd5   :  { %1581 = vmatpush1.bf16.msra.mxu1 %v2857_v47  ;;  %1543 = vmatprep.subr.bf16.mxu0 %v2868_v12  ;;  %v2943_v47 = vld [vmem:[#allocation7 + $0x10] sm:$0xff]   ;;  %v2946_v12 = vld [vmem:[#allocation7 + $0x40] sm:$0xff]  }
  0xd6   :  { %1582 = vmatprep.subr.bf16.mxu1 %v2865_v49  ;;  %v2945_v49 = vld [vmem:[#allocation7 + $0x8] sm:$0xff]  }
  0xd8   :  { %1544 = vmatpush1.bf16.msra.mxu0 %v2866_v51  ;;  %v2953_v51 = vld [vmem:[#allocation7 + $0xa8] sm:$0xff]  }
  0xd9   :  { %1583 = vmatpush1.bf16.msra.mxu1 %v2863_v50  ;;  %1545 = vmatprep.subr.bf16.mxu0 %v2874_v53  ;;  %v2947_v50 = vld [vmem:[#allocation7] sm:$0xff]  }
  0xda   :  { %1584 = vmatprep.subr.bf16.mxu1 %v2871_v52  ;;  %v2954_v52 = vld [vmem:[#allocation7 + $0xe0] sm:$0xff]  }
  0xdb   :  { %v2955_v53 = vld [vmem:[#allocation7 + $0xa0] sm:$0xff]  }
  0xdc   :  { %1546 = vmatpush1.bf16.msra.mxu0 %v2872_v55  ;;  %v2957_v55 = vld [vmem:[#allocation7 + $0x98] sm:$0xff]  }
  0xdd   :  { %1585 = vmatpush1.bf16.msra.mxu1 %v2869_v44  ;;  %1547 = vmatprep.subr.bf16.mxu0 %v2880_v57  ;;  %v2956_v44 = vld [vmem:[#allocation7 + $0xd8] sm:$0xff]   ;;  %v2959_v57 = vld [vmem:[#allocation7 + $0x90] sm:$0xff]  }
  0xde   :  { %1586 = vmatprep.subr.bf16.mxu1 %v2877_v56  ;;  %v2958_v56 = vld [vmem:[#allocation7 + $0xd0] sm:$0xff]  }
  0xe0   :  { %1548 = vmatpush2.bf16.msra.mxu0 %v2878_v59  ;;  %v2961_v59 = vld [vmem:[#allocation7 + $0x88] sm:$0xff]  }
  0xe1   :  { %1587 = vmatpush1.bf16.msra.mxu1 %v2875_v58  ;;  %1549 = vmatprep.subr.bf16.mxu0 %v2886_v61  ;;  %v2960_v58 = vld [vmem:[#allocation7 + $0xc8] sm:$0xff]   ;;  %v2963_v61 = vld [vmem:[#allocation7 + $0x80] sm:$0xff]  }
  0xe2   :  { %1588 = vmatprep.subr.bf16.mxu1 %v2883_v60  ;;  %v2962_v60 = vld [vmem:[#allocation7 + $0xc0] sm:$0xff]  }
  0xe4   :  { %1550 = vmatpush2.bf16.msra.mxu0 %v2884_v63  ;;  %v312_v63 = vlaneseq }
  0xe5   :  { %1589 = vmatpush1.bf16.msra.mxu1 %v2881_v62  ;;  %1551 = vmatprep.subr.bf16.mxu0 %v2892_v1 }
  0xe6   :  { %1590 = vmatprep.subr.bf16.mxu1 %v2889_v0  ;;  %v313_v1 = vshrl.u32 %v312_v63, 7 }
  0xe8   :  { %1552 = vmatpush2.bf16.msra.mxu0 %v2890_v3 }
  0xe9   :  { %1591 = vmatpush2.bf16.msra.mxu1 %v2887_v2  ;;  %1553 = vmatprep.subr.bf16.mxu0 %v2898_v5  ;;  %v314_v5 = vsub.s32 0, %v313_v1 }
  0xea   :  { %1592 = vmatprep.subr.bf16.mxu1 %v2895_v4  ;;  %v318_v4 = vsub.s32 1, %v313_v1 }
  0xec   :  { %1554 = vmatpush2.bf16.msra.mxu0 %v2896_v7  ;;  %v310_v7 = vld [vmem:[%s3254_s5] sm:$0xf] }
  0xed   :  { %1593 = vmatpush2.bf16.msra.mxu1 %v2893_v6  ;;  %1555 = vmatprep.subr.bf16.mxu0 %v2904_v9  ;;  %v319_v9 = vrot.slane %v310_v7, %v318_v4 }
  0xee   :  { %1594 = vmatprep.subr.bf16.mxu1 %v2901_v8 }
  0xf0   :  { %1556 = vmatpush2.bf16.msra.mxu0 %v2902_v11 }
  0xf1   :  { %1595 = vmatpush2.bf16.msra.mxu1 %v2899_v10  ;;  %1557 = vmatprep.subr.bf16.mxu0 %v2910_v15  ;;  %v315_v10 = vrot.slane %v310_v7, %v314_v5 }
  0xf2   :  { %1596 = vmatprep.subr.bf16.mxu1 %v2907_v14 }
  0xf4   :  { %1558 = vmatpush2.bf16.msra.mxu0 %v2908_v17 }
  0xf5   :  { %1597 = vmatpush2.bf16.msra.mxu1 %v2905_v16  ;;  %1559 = vmatprep.subr.bf16.mxu0 %v2916_v19 }
  0xf6   :  { %1598 = vmatprep.subr.bf16.mxu1 %v2913_v18 }
  0xf8   :  { %1560 = vmatpush2.bf16.msra.mxu0 %v2914_v22 }
  0xf9   :  { %1599 = vmatpush2.bf16.msra.mxu1 %v2911_v20  ;;  %1561 = vmatprep.subr.bf16.mxu0 %v2922_v25 }
  0xfa   :  { %1600 = vmatprep.subr.bf16.mxu1 %v2919_v24 }
  0xfc   :  { %1562 = vmatpush2.bf16.msra.mxu0 %v2920_v28 }
  0xfd   :  { %1601 = vmatpush2.bf16.msra.mxu1 %v2917_v27  ;;  %1631 = vmatprep.subr.bf16.mxu0 %v2928_v30 }
  0xfe   :  { %1602 = vmatprep.subr.bf16.mxu1 %v2925_v29 }
  0xff   :  { %1564 = vmatmul.mubr.bf16.vlgmr.msra.gmra.mxu0 %v3192_v13  ;;  %v2937_v13 = vld [vmem:[#allocation7 + $0x28] sm:$0xff]  }
 0x100   :  { %1632 = vmatpush1.bf16.msra.mxu0 %v2926_v32  ;;  %1649 = vmatprep.mubr.bf16.mxu0 %v3119_v21  ;;  %v2950_v21 = vld [vmem:[#allocation7 + $0xf0] sm:$0xff]  }
 0x101   :  { %1603 = vmatpush2.bf16.msra.mxu1 %v2923_v31  ;;  %2519 = vmatprep.subr.bf16.mxu0 %v2932_v34 }
 0x102   :  { %1604 = vmatprep.subr.bf16.mxu1 %v2931_v33 }
 0x105   :  { %1605 = vmatpush2.bf16.msra.mxu1 %v2929_v35 }
 0x106   :  { %2541 = vmatprep.subr.bf16.mxu1 %v2948_v41 }
 0x107   :  { %2467 = vmatmul.mubr.msk.bf16.vlgmr.msra.gmra.mxu0 %vm1312_vm0, %v3197_v23  ;;  %v2952_v23 = vld [vmem:[#allocation7 + $0xe8] sm:$0xff]  }
 0x108   :  { %1607 = vmatmul.mubr.bf16.vlgmr.msra.gmra.mxu1 %v3205_v26  ;;  %2520 = vmatpush3.bf16.msra.mxu0 %v2933_v36  ;;  %v2951_v26 = vld [vmem:[#allocation7 + $0xb0] sm:$0xff]  }
 0x109   :  { %2521 = vmatprep.subr.bf16.mxu0 %v2934_v37  ;;  %2542 = vmatpush3.bf16.msra.mxu1 %v2949_v42 }
 0x10a   :  { %2543 = vmatprep.subr.bf16.mxu1 %v2950_v21 }
 0x10c   :  { %2522 = vmatpush3.bf16.msra.mxu0 %v2935_v38 }
 0x10d   :  { %2523 = vmatprep.subr.bf16.mxu0 %v2936_v39  ;;  %2544 = vmatpush3.bf16.msra.mxu1 %v2951_v26 }
 0x10e   :  { %2545 = vmatprep.subr.bf16.mxu1 %v2952_v23 }
 0x110   :  { %2524 = vmatpush3.bf16.msra.mxu0 %v2937_v13 }
 0x111   :  { %2525 = vmatprep.subr.bf16.mxu0 %v2938_v40  ;;  %2546 = vmatpush3.bf16.msra.mxu1 %v2953_v51 }
 0x112   :  { %2547 = vmatprep.subr.bf16.mxu1 %v2954_v52 }
 0x114   :  { %2526 = vmatpush3.bf16.msra.mxu0 %v2939_v43 }
 0x115   :  { %2527 = vmatprep.subr.bf16.mxu0 %v2940_v45  ;;  %2548 = vmatpush3.bf16.msra.mxu1 %v2955_v53 }
 0x116   :  { %2549 = vmatprep.subr.bf16.mxu1 %v2956_v44 }
 0x118   :  { %2528 = vmatpush3.bf16.msra.mxu0 %v2941_v54 }
 0x119   :  { %2529 = vmatprep.subr.bf16.mxu0 %v2942_v46  ;;  %2550 = vmatpush3.bf16.msra.mxu1 %v2957_v55  ;;  %v326_v46 = vsub.s32 3, %v313_v1 }
 0x11a   :  { %2551 = vmatprep.subr.bf16.mxu1 %v2958_v56 }
 0x11c   :  { %2530 = vmatpush3.bf16.msra.mxu0 %v2943_v47  ;;  %v322_v47 = vsub.s32 2, %v313_v1 }
 0x11d   :  { %2531 = vmatprep.subr.bf16.mxu0 %v2944_v48  ;;  %2552 = vmatpush3.bf16.msra.mxu1 %v2959_v57 }
 0x11e   :  { %2553 = vmatprep.subr.bf16.mxu1 %v2960_v58  ;;  %v323_v51 = vrot.slane %v310_v7, %v322_v47 }
 0x120   :  { %2532 = vmatpush3.bf16.msra.mxu0 %v2945_v49 }
 0x121   :  { %2533 = vmatprep.subr.bf16.mxu0 %v2946_v12  ;;  %2554 = vmatpush3.bf16.msra.mxu1 %v2961_v59 }
 0x122   :  { %2555 = vmatprep.subr.bf16.mxu1 %v2962_v60 }
 0x124   :  { %2534 = vmatpush3.bf16.msra.mxu0 %v2947_v50  ;;  %v327_v50 = vrot.slane %v310_v7, %v326_v46 }
 0x125   :  { %2556 = vmatpush3.bf16.msra.mxu1 %v2963_v61 }
 0x13f   :  { %v1350_v2 = vpop.f32.mrf.mxu0 }
 0x140   :  { %v1393_v62 = vpop.f32.mrf.mxu1  ;;  %v1351_v16 = vadd.f32 %v1350_v2, %v315_v10 }
 0x141   :  { %v1352_v6 = vpop.f32.mrf.mxu0 }
 0x142   :  { %v1395_v0 = vpop.f32.mrf.mxu1  ;;  %v1353_v15 = vadd.f32 %v1352_v6, %v319_v9  ;;  %v1394_v25 = vadd.f32 %v1393_v62, %v1351_v16 }
 0x143   :  { %v1354_v11 = vpop.f32.mrf.mxu0 }
 0x144   :  { %v1397_v3 = vpop.f32.mrf.mxu1  ;;  %v1355_v18 = vadd.f32 %v1354_v11, %v315_v10  ;;  %v1396_v22 = vadd.f32 %v1395_v0, %v1353_v15 }
 0x145   :  { %v1356_v17 = vpop.f32.mrf.mxu0 }
 0x146   :  { %v1399_v8 = vpop.f32.mrf.mxu1  ;;  %v1357_v24 = vadd.f32 %v1356_v17, %v319_v9  ;;  %v1398_v28 = vadd.f32 %v1397_v3, %v1355_v18 }
 0x148   :  { %v1479_v14 = vpop.f32.mrf.mxu1  ;;  %v1400_v33 = vadd.f32 %v1399_v8, %v1357_v24 }
 0x14a   :  { %v1481_v19 = vpop.f32.mrf.mxu1 }
 0x14c   :  { %v1483_v30 = vpop.f32.mrf.mxu1 }
 0x14e   :  { %v1485_v39 = vpop.f32.mrf.mxu1 }
 0x17f   :  { %v1436_v20 = vpop.f32.mrf.mxu0 }
 0x180   :  { %v1437_v31 = vadd.f32 %v1436_v20, %v1394_v25  ;;  %v2964_v25 = vld [vmem:[#allocation8 + $0x38] sm:$0xff]  }
 0x181   :  { %v1438_v27 = vpop.f32.mrf.mxu0 }
 0x182   :  { %v1439_v29 = vadd.f32 %v1438_v27, %v1396_v22  ;;  %v1480_v13 = vadd.f32 %v1479_v14, %v1437_v31  ;;  %v3120_v27 = vmov 0.0   ;;  %v2968_v31 = vld [vmem:[#allocation8 + $0x18] sm:$0xff]  }
 0x183   :  { %v1440_v32 = vpop.f32.mrf.mxu0  ;;  %2581 = vmatprep.subr.bf16.mxu0 %v3120_v27  ;;  %2601 = vmatprep.subr.bf16.mxu1 %v3120_v27 }
 0x184   :  { %v1441_v34 = vadd.f32 %v1440_v32, %v1398_v28  ;;  %v1482_v36 = vadd.f32 %v1481_v19, %v1439_v29  ;;  %v1660_v43 = vmax.f32 %v1480_v13, 0.0  ;;  %v2965_v28 = vld [vmem:[#allocation8 + $0x30] sm:$0xff]   ;;  %v2966_v29 = vld [vmem:[#allocation8 + $0x28] sm:$0xff]  }
 0x185   :  { %v1442_v35 = vpop.f32.mrf.mxu0  ;;  %v2969_v32 = vld [vmem:[#allocation8 + $0x10] sm:$0xff]  }
 0x186   :  { %v1484_v37 = vadd.f32 %v1483_v30, %v1441_v34  ;;  %v1443_v38 = vadd.f32 %v1442_v35, %v1400_v33  ;;  %v1661_v42 = vmax.f32 %v1482_v36, 0.0  ;;  %v2967_v30 = vld [vmem:[#allocation8 + $0x20] sm:$0xff]   ;;  %v2970_v33 = vld [vmem:[#allocation8 + $0x8] sm:$0xff]   ;;  %v2972_v35 = vld [vmem:[#allocation10 + $0x38] sm:$0xff]  }
 0x187   :  { %v2971_v34 = vld [vmem:[#allocation8] sm:$0xff]   ;;  %v2973_v36 = vld [vmem:[#allocation10 + $0x30] sm:$0xff]  }
 0x188   :  { %v1486_v40 = vadd.f32 %v1485_v39, %v1443_v38  ;;  %v1664_v41 = vmax.f32 %v1484_v37, 0.0  ;;  %v1522_v23 = vpop.f32.mrf.mxu1  ;;  %v2974_v37 = vld [vmem:[#allocation10 + $0x28] sm:$0xff]   ;;  %v2975_v38 = vld [vmem:[#allocation10 + $0x20] sm:$0xff]   ;;  %v2976_v39 = vld [vmem:[#allocation10 + $0x18] sm:$0xff]  }
 0x189   :  { %v1523_v56 = vadd.f32 %v1522_v23, %v323_v51 }
 0x18a   :  { %v1665_v21 = vmax.f32 %v1486_v40, 0.0  ;;  %v1668_v26 = vpack.c.bf16 %v1664_v41, %v1660_v43  ;;  %v1524_v54 = vpop.f32.mrf.mxu1 }
 0x18b   :  { %v1525_v55 = vadd.f32 %v1524_v54, %v327_v50 }
 0x18c   :  { %v1669_v45 = vpack.c.bf16 %v1665_v21, %v1661_v42  ;;  %v1526_v49 = vpop.f32.mrf.mxu1 }
 0x18d   :  { %v1527_v59 = vadd.f32 %v1526_v49, %v323_v51 }
 0x18e   :  { %1967 = vmatprep.mubr.bf16.mxu0 %v1669_v45  ;;  %v1528_v53 = vpop.f32.mrf.mxu1  ;;  %v2468_v45 = vld [vmem:[%s3254_s5 + $0x4] ss:$0 sm:$0xff] }
 0x18f   :  { %1968 = vmatmul.mubr.bf16.vlgmr.msra.gmra.mxu0 %v1668_v26  ;;  %v1529_v0 = vadd.f32 %v1528_v53, %v327_v50 }
 0x190   :  { %2582 = vmatpush3.bf16.msra.mxu0 %v2964_v25  ;;  %2597 = vmatprep.mubr.msk.bf16.mxu0 %vm3121_vm1, %v3120_v27 }
 0x191   :  { %2583 = vmatprep.subr.bf16.mxu0 %v3120_v27 }
 0x194   :  { %2584 = vmatpush3.bf16.msra.mxu0 %v2965_v28 }
 0x195   :  { %2585 = vmatprep.subr.bf16.mxu0 %v3120_v27 }
 0x198   :  { %2586 = vmatpush3.bf16.msra.mxu0 %v2966_v29 }
 0x199   :  { %2587 = vmatprep.subr.bf16.mxu0 %v3120_v27 }
 0x19c   :  { %2588 = vmatpush3.bf16.msra.mxu0 %v2967_v30 }
 0x19d   :  { %2589 = vmatprep.subr.bf16.mxu0 %v3120_v27 }
 0x1a0   :  { %2590 = vmatpush3.bf16.msra.mxu0 %v2968_v31 }
 0x1a1   :  { %2591 = vmatprep.subr.bf16.mxu0 %v3120_v27 }
 0x1a4   :  { %2592 = vmatpush3.bf16.msra.mxu0 %v2969_v32 }
 0x1a5   :  { %2593 = vmatprep.subr.bf16.mxu0 %v3120_v27 }
 0x1a8   :  { %2594 = vmatpush3.bf16.msra.mxu0 %v2970_v33 }
 0x1a9   :  { %2595 = vmatprep.subr.bf16.mxu0 %v3120_v27 }
 0x1ac   :  { %2596 = vmatpush3.bf16.msra.mxu0 %v2971_v34 }
 0x1bf   :  { %v1565_v48 = vpop.f32.mrf.mxu0 }
 0x1c0   :  { %v1566_v61 = vadd.f32 %v1565_v48, %v1523_v56  ;;  %v2978_v56 = vld [vmem:[#allocation10 + $0x8] sm:$0xff]  }
 0x1c1   :  { %v1567_v12 = vpop.f32.mrf.mxu0 }
 0x1c2   :  { %v1568_v60 = vadd.f32 %v1567_v12, %v1525_v55  ;;  %v2977_v55 = vld [vmem:[#allocation10 + $0x10] sm:$0xff]  }
 0x1c3   :  { %v1569_v52 = vpop.f32.mrf.mxu0 }
 0x1c4   :  { %v1570_v2 = vadd.f32 %v1569_v52, %v1527_v59 }
 0x1c5   :  { %v1571_v44 = vpop.f32.mrf.mxu0 }
 0x1c6   :  { %v1572_v6 = vadd.f32 %v1571_v44, %v1529_v0 }
 0x1c7   :  { %v1651_v58 = vpop.f32.mrf.mxu0 }
 0x1c8   :  { %v1608_v57 = vpop.f32.mrf.mxu1 }
 0x1c9   :  { %v1653_v63 = vpop.f32.mrf.mxu0  ;;  %v1609_v3 = vadd.f32 %v1608_v57, %v1566_v61  ;;  %v2979_v57 = vld [vmem:[#allocation10] sm:$0xff]  }
 0x1ca   :  { %v1610_v62 = vpop.f32.mrf.mxu1 }
 0x1cb   :  { %v1611_v1 = vadd.f32 %v1610_v62, %v1568_v60  ;;  %v1655_v5 = vpop.f32.mrf.mxu0  ;;  %v1652_v15 = vadd.f32 %v1651_v58, %v1609_v3  ;;  %v2501_v58 = vld [vmem:[%s3254_s5 + $0x5] ss:$0 sm:$0xff] }
 0x1cc   :  { %v1612_v4 = vpop.f32.mrf.mxu1 }
 0x1cd   :  { %v1613_v7 = vadd.f32 %v1612_v4, %v1570_v2  ;;  %v1657_v9 = vpop.f32.mrf.mxu0  ;;  %v1654_v10 = vadd.f32 %v1653_v63, %v1611_v1  ;;  %v1662_v20 = vmax.f32 %v1652_v15, 0.0  ;;  %v2510_v4 = vld [vmem:[%s3254_s5 + $0x6] ss:$0 sm:$0xff] }
 0x1ce   :  { %v1614_v8 = vpop.f32.mrf.mxu1 }
 0x1cf   :  { %v1656_v11 = vadd.f32 %v1655_v5, %v1613_v7  ;;  %v1615_v14 = vadd.f32 %v1614_v8, %v1572_v6  ;;  %v1663_v18 = vmax.f32 %v1654_v10, 0.0 }
 0x1d1   :  { %v1658_v16 = vadd.f32 %v1657_v9, %v1615_v14  ;;  %v1666_v17 = vmax.f32 %v1656_v11, 0.0 }
 0x1d3   :  { %v1667_v19 = vmax.f32 %v1658_v16, 0.0  ;;  %v1670_v24 = vpack.c.bf16 %v1666_v17, %v1662_v20 }
 0x1d5   :  { %v1671_v22 = vpack.c.bf16 %v1667_v19, %v1663_v18 }
 0x1d7   :  { %2008 = vmatprep.mubr.bf16.mxu1 %v1671_v22 }
 0x1d8   :  { %2009 = vmatmul.mubr.bf16.vlgmr.msra.gmra.mxu1 %v1670_v24 }
 0x1d9   :  { %2617 = vmatprep.mubr.msk.bf16.mxu1 %vm3121_vm1, %v3120_v27  ;;  %2602 = vmatpush3.bf16.msra.mxu1 %v2972_v35 }
 0x1da   :  { %2603 = vmatprep.subr.bf16.mxu1 %v3120_v27 }
 0x1dd   :  { %2604 = vmatpush3.bf16.msra.mxu1 %v2973_v36 }
 0x1de   :  { %2605 = vmatprep.subr.bf16.mxu1 %v3120_v27 }
 0x1e1   :  { %2606 = vmatpush3.bf16.msra.mxu1 %v2974_v37 }
 0x1e2   :  { %2607 = vmatprep.subr.bf16.mxu1 %v3120_v27 }
 0x1e5   :  { %2608 = vmatpush3.bf16.msra.mxu1 %v2975_v38 }
 0x1e6   :  { %2609 = vmatprep.subr.bf16.mxu1 %v3120_v27 }
 0x1e9   :  { %2610 = vmatpush3.bf16.msra.mxu1 %v2976_v39 }
 0x1ea   :  { %2611 = vmatprep.subr.bf16.mxu1 %v3120_v27 }
 0x1ed   :  { %2612 = vmatpush3.bf16.msra.mxu1 %v2977_v55 }
 0x1ee   :  { %2613 = vmatprep.subr.bf16.mxu1 %v3120_v27 }
 0x1f1   :  { %2614 = vmatpush3.bf16.msra.mxu1 %v2978_v56 }
 0x1f2   :  { %2615 = vmatprep.subr.bf16.mxu1 %v3120_v27 }
 0x1f5   :  { %2616 = vmatpush3.bf16.msra.mxu1 %v2979_v57 }
 0x24f   :  { %v2535_v13 = vpop.f32.mrf.mxu0 }
 0x251   :  { %v2536_v40 = vpop.f32.mrf.mxu0 }
 0x252   :  { %v2537_v43 = vadd.f32 %v2536_v40, %v2535_v13 }
 0x253   :  { %v2538_v41 = vpop.f32.mrf.mxu0 }
 0x254   :  { %v1970_v47 = vadd.f32 %v2537_v43, %v2468_v45 }
 0x255   :  { %v2539_v42 = vpop.f32.mrf.mxu0 }
 0x256   :  { %v2540_v23 = vadd.f32 %v2539_v42, %v2538_v41 }
 0x258   :  { %v1973_v49 = vadd.f32 %v2540_v23, %v2468_v45 }
 0x298   :  { %v2557_v21 = vpop.f32.mrf.mxu1 }
 0x29a   :  { %v2558_v26 = vpop.f32.mrf.mxu1 }
 0x29b   :  { %v2559_v54 = vadd.f32 %v2558_v26, %v2557_v21 }
 0x29c   :  { %v2560_v46 = vpop.f32.mrf.mxu1 }
 0x29d   :  { %v2011_v12 = vadd.f32 %v2559_v54, %v1970_v47 }
 0x29e   :  { %v2561_v48 = vpop.f32.mrf.mxu1 }
 0x29f   :  { %v2562_v50 = vadd.f32 %v2561_v48, %v2560_v46  ;;  %v2017_v52 = vmax.f32 %v2011_v12, 0.0 }
 0x2a1   :  { %v2014_v51 = vadd.f32 %v2562_v50, %v1973_v49 }
 0x2a3   :  { %v2018_v53 = vmax.f32 %v2014_v51, 0.0 }
 0x2a5   :  { %v2019_v44 = vpack.c.bf16 %v2018_v53, %v2017_v52 }
 0x2a7   :  { %2598 = vmatmul.mubr.bf16.vlgmr.msra.gmra.mxu0 %v2019_v44 }
 0x367   :  { %v2125_v59 = vpop.f32.mrf.mxu0 }
 0x368   :  { %v2126_v61 = vadd.f32 %v2501_v58, %v2125_v59 }
 0x369   :  { %v2599_v60 = vpop.f32.mrf.mxu0 }
 0x36a   :  { %v2132_v2 = vmax.f32 %v2126_v61, 0.0 }
 0x36b   :  { %v2128_v62 = vpop.f32.mrf.mxu0 }
 0x36c   :  { %v2129_v63 = vadd.f32 %v2501_v58, %v2128_v62 }
 0x36d   :  { %v2600_v0 = vpop.f32.mrf.mxu0 }
 0x36e   :  { %v2133_v1 = vmax.f32 %v2129_v63, 0.0 }
 0x370   :  { %v2134_v3 = vpack.c.bf16 %v2133_v1, %v2132_v2 }
 0x372   :  { %2618 = vmatmul.mubr.bf16.vlgmr.msra.gmra.mxu1 %v2134_v3 }
 0x432   :  { %v2240_v5 = vpop.f32.mrf.mxu1 }
 0x433   :  { %v2241_v6 = vadd.f32 %v2510_v4, %v2240_v5 }
 0x434   :  { %v2619_v7 = vpop.f32.mrf.mxu1 }
 0x435   :  { %v2247_v8 = vmax.f32 %v2241_v6, 0.0 }
 0x436   :  { %v2243_v9 = vpop.f32.mrf.mxu1 }
 0x437   :  { %2249 = vst [vmem:[#allocation11] sm:$0xff] %v2247_v8  ;;  %v2244_v10 = vadd.f32 %v2510_v4, %v2243_v9 }
 0x438   :  { %v2620_v11 = vpop.f32.mrf.mxu1 }
 0x439   :  { %v2248_v14 = vmax.f32 %v2244_v10, 0.0 }
 0x43b   :  { %2250 = vst [vmem:[#allocation11 + $0x8] sm:$0xff] %v2248_v14 }
 0x43c   :  { %3091 = shalt.err (!%p3088_p1)
}
 0x43d   :  { %s3123_s5 = smov 128   ;;  %s3124_s10 = smov 8  }
 0x43e   :  { %2262 = dma.vmem_to_hbm [thread:$0]  %s2257_s8, 256, %s3255_s6, [#allocation4], %s3123_s5, %s3123_s5, %s3124_s10  }
 0x43f   :  { %3106 = dma.done.wait [#allocation4], 256  }
 0x440   :  { %3107 = vsyncadd [#allocation4], 4294967040 }
 0x441   :  { %2266 = vsyncpa [#allocation3], 1 }
 0x442   :  { %2267 = vsyncpa [#allocation6], 1 }
 0x443   :  { %2268 = vsyncpa [#allocation9], 1 }
 0x444   :  { %2269 = vsyncpa [#allocation4], 1 }

</bundles_post_ra>
